<compile_context>
chip_gen: v5e
topology: v5e:2x2
jax: 0.10.0
libtpu: 0.0.40
codegen_flags: <defaults>
</compile_context>

<pallas_src>
import functools

import jax
import jax.numpy as jnp
from jax import lax
from jax.experimental import pallas as pl
from jax.experimental.pallas import tpu as pltpu

IN_DIM = 784      # 1 * 28 * 28
HP = 128          # hidden dim 28 padded to 128 lanes
NP = 128          # output dim 10 padded to 128 lanes
N_OUT = 10


def mnist_kernel(x_ref, w1_ref, b1_ref, w2_ref, b2_ref, out_ref, *, batch, tile_b):
    # x: (TB, 784) f32, w1: (784, 128) bf16, b1: (1, 128) f32,
    # w2: (128, 128) bf16, b2: (1, 128) f32 (lanes >= 10 set to -1e30),
    # out: (TB, 128) bf16
    x = x_ref[...]
    if batch % tile_b != 0:
        # Ragged last tile: rows past the real batch hold unspecified data
        # (their stores are dropped anyway) -- zero them so nothing weird
        # feeds exp(). Trace-time conditional: no cost when batch % TB == 0.
        row = pl.program_id(0) * tile_b + lax.broadcasted_iota(
            jnp.int32, (tile_b, 1), 0)
        x = jnp.where(row < batch, x, 0.0)
    x = x.astype(jnp.bfloat16)                                 # cast in-kernel

    h = jnp.dot(x, w1_ref[...], preferred_element_type=jnp.float32) + b1_ref[...]
    h = jnp.maximum(h, 0.0)                                    # relu (f32)
    logits = (
        jnp.dot(h.astype(jnp.bfloat16), w2_ref[...],
                preferred_element_type=jnp.float32)
        + b2_ref[...]
    )
    # log_softmax over dim=1; padded lanes carry -1e30 bias -> exp() == 0,
    # so max/sum over all 128 lanes equal the reduction over the real 10 lanes.
    m = jnp.max(logits, axis=-1, keepdims=True)
    shifted = logits - m
    lse = jnp.log(jnp.sum(jnp.exp(shifted), axis=-1, keepdims=True))
    out_ref[...] = (shifted - lse).astype(jnp.bfloat16)


def _default_batch_tile():
    # Per-generation tile sizing (kernel is HBM-bound; bigger tiles amortize
    # the ~0.35 us per-grid-step overhead).  v6e/v7x: 4096.  v5e (and unknown
    # chips): 1024 -- at ~820 GB/s the step overhead is already <10%.
    try:
        kind = jax.devices()[0].device_kind.lower()
    except Exception:
        return 1024
    if "v6" in kind or "v7" in kind:
        return 4096
    return 1024


@functools.partial(jax.jit, static_argnames=("tb",))
def mnist_forward(x_nchw, w1, b1, w2, b2, tb=None):
    if tb is None:
        tb = _default_batch_tile()
    B = x_nchw.shape[0]
    x = x_nchw.reshape(B, IN_DIM)          # torch .view equivalent; stays f32

    # Batch tile selection (no jnp.pad of x):
    #  - B <= tb: cover the whole batch with one block (full-dim block is
    #    always layout-legal); if B >= 1024 and splittable, use two tiles so
    #    both v7x TensorCores get work via the ("parallel",) axis.
    #  - B > tb: fixed tile of `tb` rows (multiple of 8); a ragged last tile
    #    is masked inside the kernel.
    if B <= tb:
        if B >= 1024 and B % 16 == 0:
            TB = B // 2
        else:
            TB = B
    else:
        TB = tb
    grid = (pl.cdiv(B, TB),)

    # Lane-pad parameters (zeros are exact: padded hidden lanes are relu(0)=0
    # and padded w2 rows/cols are 0; padded output lanes masked via -1e30 bias).
    w1p = jnp.zeros((IN_DIM, HP), jnp.bfloat16).at[:, :28].set(w1.astype(jnp.bfloat16))
    b1p = jnp.zeros((1, HP), jnp.float32).at[:, :28].set(b1.astype(jnp.float32))
    w2p = jnp.zeros((HP, NP), jnp.bfloat16).at[:28, :N_OUT].set(w2.astype(jnp.bfloat16))
    b2p = jnp.full((1, NP), -1e30, jnp.float32).at[:, :N_OUT].set(b2.astype(jnp.float32))

    kernel = functools.partial(mnist_kernel, batch=B, tile_b=TB)

    cost = pl.CostEstimate(
        flops=2 * B * (IN_DIM * HP + HP * NP),
        transcendentals=B * (NP + 1),
        bytes_accessed=B * (IN_DIM * 4 + NP * 2) + (IN_DIM * HP + HP * NP) * 2,
    )

    out = pl.pallas_call(
        kernel,
        out_shape=jax.ShapeDtypeStruct((B, NP), jnp.bfloat16),
        grid=grid,
        in_specs=[
            # x: only streamed operand, tiled over batch, f32 straight from HBM.
            # (Optional knob if xprof shows DMA gaps: pipeline_mode=pl.Buffered(3).)
            pl.BlockSpec((TB, IN_DIM), lambda i: (i, 0)),
            pl.BlockSpec((IN_DIM, HP), lambda i: (0, 0)),   # weights stay resident
            pl.BlockSpec((1, HP), lambda i: (0, 0)),
            pl.BlockSpec((HP, NP), lambda i: (0, 0)),
            pl.BlockSpec((1, NP), lambda i: (0, 0)),
        ],
        out_specs=pl.BlockSpec((TB, NP), lambda i: (i, 0)),
        compiler_params=pltpu.CompilerParams(
            dimension_semantics=("parallel",),
            vmem_limit_bytes=48 * 1024 * 1024,
        ),
        cost_estimate=cost,
    )(x, w1p, b1p, w2p, b2p)

    # Slice the 10 real classes; upcast of the tiny (B, 10) result is free.
    return out[:, :N_OUT].astype(jnp.float32)


def _reference(x_nchw, w1, b1, w2, b2):
    # Pure-JAX reference with the same bf16 matmul-input precision.
    B = x_nchw.shape[0]
    x = x_nchw.reshape(B, IN_DIM).astype(jnp.bfloat16)
    h = jnp.dot(x, w1.astype(jnp.bfloat16),
                preferred_element_type=jnp.float32) + b1.astype(jnp.float32)
    h = jnp.maximum(h, 0.0)
    logits = jnp.dot(h.astype(jnp.bfloat16), w2.astype(jnp.bfloat16),
                     preferred_element_type=jnp.float32) + b2.astype(jnp.float32)
    return jax.nn.log_softmax(logits, axis=-1)


if __name__ == "__main__":
    key = jax.random.PRNGKey(0)
    k_x, k_w1, k_b1, k_w2, k_b2 = jax.random.split(key, 5)

    B = 8
    # Input matches nn.Module forward contract: [batch_size, 1, 28, 28]
    x = jax.random.normal(k_x, (B, 1, 28, 28), dtype=jnp.float32)

    # Deterministic synthetic parameters (nn.Linear(784,28), nn.Linear(28,10)),
    # stored in matmul layout [in, out] (== PyTorch weight.T).
    w1 = jax.random.normal(k_w1, (784, 28), dtype=jnp.float32) * 0.05
    b1 = jax.random.normal(k_b1, (28,), dtype=jnp.float32) * 0.05
    w2 = jax.random.normal(k_w2, (28, 10), dtype=jnp.float32) * 0.05
    b2 = jax.random.normal(k_b2, (10,), dtype=jnp.float32) * 0.05

    out = mnist_forward(x, w1, b1, w2, b2)
    out = jax.block_until_ready(out)

    assert out.shape == (B, 10)
    # log_softmax rows must sum (in prob space) to ~1 (bf16 output -> loose tol).
    probs_sum = jnp.sum(jnp.exp(out), axis=-1)
    assert jnp.allclose(probs_sum, jnp.ones((B,)), atol=1e-2)
    # Match a pure-JAX reference at the same precision.
    ref = _reference(x, w1, b1, w2, b2)
    assert jnp.allclose(out, ref, atol=2e-2, rtol=2e-2)

    print("KERNEL_OK")
</pallas_src>

<mosaic_0001>
module attributes {stable_mosaic.version = 11 : i64} {
  func.func @mnist_kernel(%arg0: i32, %arg1: memref<8x784xf32, #tpu.memory_space<vmem>>, %arg2: memref<784x128xbf16, #tpu.memory_space<vmem>>, %arg3: memref<1x128xf32, #tpu.memory_space<vmem>>, %arg4: memref<128x128xbf16, #tpu.memory_space<vmem>>, %arg5: memref<1x128xf32, #tpu.memory_space<vmem>>, %arg6: memref<8x128xbf16, #tpu.memory_space<vmem>>) attributes {dimension_semantics = [#tpu.dimension_semantics<parallel>], iteration_bounds = array<i64: 1>, scalar_prefetch = 0 : i64, scratch_operands = 0 : i64, tpu.core_type = #tpu.core_type<tc>, window_params = [{transform_indices = @transform_0, window_bounds = array<i64: 8, 784>}, {pipeline_mode = #tpu.pipeline_mode<synchronous>, transform_indices = @transform_1, window_bounds = array<i64: 784, 128>}, {pipeline_mode = #tpu.pipeline_mode<synchronous>, transform_indices = @transform_2, window_bounds = array<i64: 1, 128>}, {pipeline_mode = #tpu.pipeline_mode<synchronous>, transform_indices = @transform_3, window_bounds = array<i64: 128, 128>}, {pipeline_mode = #tpu.pipeline_mode<synchronous>, transform_indices = @transform_4, window_bounds = array<i64: 1, 128>}, {transform_indices = @transform_5, window_bounds = array<i64: 8, 128>}]} {
    %c0 = arith.constant 0 : index
    %c0_0 = arith.constant 0 : index
    %0 = vector.load %arg1[%c0, %c0_0] : memref<8x784xf32, #tpu.memory_space<vmem>>, vector<8x784xf32>
    %1 = arith.truncf %0 : vector<8x784xf32> to vector<8x784xbf16>
    %c0_1 = arith.constant 0 : index
    %c0_2 = arith.constant 0 : index
    %2 = vector.load %arg2[%c0_1, %c0_2] : memref<784x128xbf16, #tpu.memory_space<vmem>>, vector<784x128xbf16>
    %cst = arith.constant dense<0.000000e+00> : vector<8x128xf32>
    %3 = tpu.matmul %1, %2, %cst {dimension_numbers = #tpu.dot_dimension_numbers<[1], [0], [0], [1], [0, 0, 1, 1], [], []>} : vector<8x784xbf16>, vector<784x128xbf16>, vector<8x128xf32> -> vector<8x128xf32>
    %c0_3 = arith.constant 0 : index
    %c0_4 = arith.constant 0 : index
    %4 = vector.load %arg3[%c0_3, %c0_4] : memref<1x128xf32, #tpu.memory_space<vmem>>, vector<1x128xf32>
    %5 = vector.broadcast %4 : vector<1x128xf32> to vector<8x128xf32>
    %6 = arith.addf %3, %5 : vector<8x128xf32>
    %cst_5 = arith.constant 0.000000e+00 : f32
    %7 = vector.broadcast %cst_5 : f32 to vector<8x128xf32>
    %8 = arith.maximumf %6, %7 : vector<8x128xf32>
    %9 = arith.truncf %8 : vector<8x128xf32> to vector<8x128xbf16>
    %c0_6 = arith.constant 0 : index
    %c0_7 = arith.constant 0 : index
    %10 = vector.load %arg4[%c0_6, %c0_7] : memref<128x128xbf16, #tpu.memory_space<vmem>>, vector<128x128xbf16>
    %cst_8 = arith.constant dense<0.000000e+00> : vector<8x128xf32>
    %11 = tpu.matmul %9, %10, %cst_8 {dimension_numbers = #tpu.dot_dimension_numbers<[1], [0], [0], [1], [0, 0, 1, 1], [], []>} : vector<8x128xbf16>, vector<128x128xbf16>, vector<8x128xf32> -> vector<8x128xf32>
    %c0_9 = arith.constant 0 : index
    %c0_10 = arith.constant 0 : index
    %12 = vector.load %arg5[%c0_9, %c0_10] : memref<1x128xf32, #tpu.memory_space<vmem>>, vector<1x128xf32>
    %13 = vector.broadcast %12 : vector<1x128xf32> to vector<8x128xf32>
    %14 = arith.addf %11, %13 : vector<8x128xf32>
    %cst_11 = arith.constant dense<0xFF800000> : vector<8xf32>
    %15 = vector.multi_reduction <maximumf>, %14, %cst_11 [1] : vector<8x128xf32> to vector<8xf32>
    %16 = vector.shape_cast %15 : vector<8xf32> to vector<8x1xf32>
    %17 = vector.broadcast %16 : vector<8x1xf32> to vector<8x128xf32>
    %18 = arith.subf %14, %17 : vector<8x128xf32>
    %19 = math.exp %18 : vector<8x128xf32>
    %cst_12 = arith.constant dense<0.000000e+00> : vector<8xf32>
    %20 = vector.multi_reduction <add>, %19, %cst_12 [1] : vector<8x128xf32> to vector<8xf32>
    %21 = vector.shape_cast %20 : vector<8xf32> to vector<8x1xf32>
    %22 = math.log %21 : vector<8x1xf32>
    %23 = vector.broadcast %22 : vector<8x1xf32> to vector<8x128xf32>
    %24 = arith.subf %18, %23 : vector<8x128xf32>
    %25 = arith.truncf %24 : vector<8x128xf32> to vector<8x128xbf16>
    %c0_13 = arith.constant 0 : index
    %c0_14 = arith.constant 0 : index
    %26 = vector.load %arg6[%c0_13, %c0_14] : memref<8x128xbf16, #tpu.memory_space<vmem>>, vector<8x128xbf16>
    tpu.vector_store %arg6[%c0_13, %c0_14], %25 {strides = array<i32>} : memref<8x128xbf16, #tpu.memory_space<vmem>>, vector<8x128xbf16>,
    return
  }
  func.func @transform_0(%arg0: i32) -> (i32, i32) {
    %c0_i32 = arith.constant 0 : i32
    %c0_i32_0 = arith.constant 0 : i32
    return %arg0, %c0_i32 : i32, i32
  }
  func.func @transform_1(%arg0: i32) -> (i32, i32) {
    %c0_i32 = arith.constant 0 : i32
    %c0_i32_0 = arith.constant 0 : i32
    %c0_i32_1 = arith.constant 0 : i32
    return %c0_i32, %c0_i32_0 : i32, i32
  }
  func.func @transform_2(%arg0: i32) -> (i32, i32) {
    %c0_i32 = arith.constant 0 : i32
    %c0_i32_0 = arith.constant 0 : i32
    %c0_i32_1 = arith.constant 0 : i32
    return %c0_i32, %c0_i32_0 : i32, i32
  }
  func.func @transform_3(%arg0: i32) -> (i32, i32) {
    %c0_i32 = arith.constant 0 : i32
    %c0_i32_0 = arith.constant 0 : i32
    %c0_i32_1 = arith.constant 0 : i32
    return %c0_i32, %c0_i32_0 : i32, i32
  }
  func.func @transform_4(%arg0: i32) -> (i32, i32) {
    %c0_i32 = arith.constant 0 : i32
    %c0_i32_0 = arith.constant 0 : i32
    %c0_i32_1 = arith.constant 0 : i32
    return %c0_i32, %c0_i32_0 : i32, i32
  }
  func.func @transform_5(%arg0: i32) -> (i32, i32) {
    %c0_i32 = arith.constant 0 : i32
    %c0_i32_0 = arith.constant 0 : i32
    return %arg0, %c0_i32 : i32, i32
  }
}

</mosaic_0001>

<bundles_post_ra>
// kernel: mnist_forward.1
= control target key start
LH: loop header
LB: loop body
LE: loop exit
PB: predicated region body
PF: predicated region fallthrough
CT: control target
= control target key end

     0   :  { %vm431_vm0 = vcmask 130048   ;;  %s1148_s1 = inlined_call_operand.vmem [shape: bf16[784,128], index: 1, kind: input, shape index: {}]   ;;  %s1149_s2 = inlined_call_operand.vmem [shape: f32[1,128], index: 2, kind: input, shape index: {}]   ;;  %s1150_s0 = inlined_call_operand.vmem [shape: f32[8,784], index: 0, kind: input, shape index: {}]   ;;  %s1151_s4 = inlined_call_operand.vmem [shape: f32[1,128], index: 4, kind: input, shape index: {}]   ;;  %s1152_s3 = inlined_call_operand.vmem [shape: bf16[128,128], index: 3, kind: input, shape index: {}]   ;;  %s1153_s5 = inlined_call_operand.vmem [shape: bf16[8,128], index: 5, kind: output, shape index: {}]  }
   0x1   :  { %v861_v0 = vld [vmem:[%s1148_s1 + $0x38] sm:$0xff]  ;;  %v860_v3 = vld [vmem:[%s1148_s1 + $0x30] sm:$0xff]  ;;  %v859_v8 = vld [vmem:[%s1148_s1 + $0x28] sm:$0xff] }
   0x2   :  { %v869_v1 = vld [vmem:[%s1148_s1 + $0x78] sm:$0xff]  ;;  %435 = vmatpush.bf16.msra.mxu0 %v861_v0  ;;  %v868_v4 = vld [vmem:[%s1148_s1 + $0x70] sm:$0xff]  ;;  %v867_v9 = vld [vmem:[%s1148_s1 + $0x68] sm:$0xff] }
   0x3   :  { %v877_v2 = vld [vmem:[%s1148_s1 + $0xb8] sm:$0xff]  ;;  %448 = vmatpush.bf16.msra.mxu1 %v869_v1  ;;  %v876_v5 = vld [vmem:[%s1148_s1 + $0xb0] sm:$0xff]  ;;  %v875_v10 = vld [vmem:[%s1148_s1 + $0xa8] sm:$0xff] }
   0x4   :  { %461 = vmatpush.bf16.msra.mxu2 %v877_v2  ;;  %v885_v6 = vld [vmem:[%s1148_s1 + $0xf8] sm:$0xff]  ;;  %v884_v7 = vld [vmem:[%s1148_s1 + $0xf0] sm:$0xff]  ;;  %v883_v11 = vld [vmem:[%s1148_s1 + $0xe8] sm:$0xff] }
   0x5   :  { %474 = vmatpush.bf16.msra.mxu3 %v885_v6  ;;  %v858_v12 = vld [vmem:[%s1148_s1 + $0x20] sm:$0xff]  ;;  %v857_v16 = vld [vmem:[%s1148_s1 + $0x18] sm:$0xff]  ;;  %v856_v20 = vld [vmem:[%s1148_s1 + $0x10] sm:$0xff] }
   0x6   :  { %436 = vmatpush.bf16.msra.mxu0 %v860_v3  ;;  %v866_v13 = vld [vmem:[%s1148_s1 + $0x60] sm:$0xff]  ;;  %v865_v17 = vld [vmem:[%s1148_s1 + $0x58] sm:$0xff]  ;;  %v864_v21 = vld [vmem:[%s1148_s1 + $0x50] sm:$0xff] }
   0x7   :  { %449 = vmatpush.bf16.msra.mxu1 %v868_v4  ;;  %v874_v14 = vld [vmem:[%s1148_s1 + $0xa0] sm:$0xff]  ;;  %v873_v18 = vld [vmem:[%s1148_s1 + $0x98] sm:$0xff]  ;;  %v872_v22 = vld [vmem:[%s1148_s1 + $0x90] sm:$0xff] }
   0x8   :  { %462 = vmatpush.bf16.msra.mxu2 %v876_v5  ;;  %v882_v15 = vld [vmem:[%s1148_s1 + $0xe0] sm:$0xff]  ;;  %v881_v19 = vld [vmem:[%s1148_s1 + $0xd8] sm:$0xff]  ;;  %v880_v23 = vld [vmem:[%s1148_s1 + $0xd0] sm:$0xff] }
   0x9   :  { %475 = vmatpush.bf16.msra.mxu3 %v884_v7  ;;  %v855_v24 = vld [vmem:[%s1148_s1 + $0x8] sm:$0xff]  ;;  %v854_v27 = vld [vmem:[%s1148_s1] sm:$0xff]  ;;  %v893_v32 = vld [vmem:[%s1148_s1 + $0x138] sm:$0xff] }
   0xa   :  { %437 = vmatpush.bf16.msra.mxu0 %v859_v8  ;;  %v863_v25 = vld [vmem:[%s1148_s1 + $0x48] sm:$0xff]  ;;  %v862_v29 = vld [vmem:[%s1148_s1 + $0x40] sm:$0xff]  ;;  %v901_v33 = vld [vmem:[%s1148_s1 + $0x178] sm:$0xff] }
   0xb   :  { %450 = vmatpush.bf16.msra.mxu1 %v867_v9  ;;  %v871_v26 = vld [vmem:[%s1148_s1 + $0x88] sm:$0xff]  ;;  %v21_v30 = vld [vmem:[%s1150_s0] sm:$0xff]  ;;  %v23_v35 = vld [vmem:[%s1150_s0 + $0x10] sm:$0xff] }
   0xc   :  { %463 = vmatpush.bf16.msra.mxu2 %v875_v10  ;;  %v879_v28 = vld [vmem:[%s1148_s1 + $0xc8] sm:$0xff]  ;;  %v870_v34 = vld [vmem:[%s1148_s1 + $0x80] sm:$0xff]  ;;  %v28_v36 = vpack.c.bf16 %v21_v30, %v21_v30  ;;  %v24_v40 = vld [vmem:[%s1150_s0 + $0x18] sm:$0xff]  ;;  %v30_v43 = vpack.c.bf16 %v23_v35, %v23_v35 }
   0xd   :  { %476 = vmatpush.bf16.msra.mxu3 %v883_v11  ;;  %v22_v31 = vld [vmem:[%s1150_s0 + $0x8] sm:$0xff]  ;;  %v878_v38 = vld [vmem:[%s1148_s1 + $0xc0] sm:$0xff]  ;;  %v892_v41 = vld [vmem:[%s1148_s1 + $0x130] sm:$0xff]  ;;  %v31_v44 = vpack.c.bf16 %v24_v40, %v24_v40 }
   0xe   :  { %438 = vmatpush.bf16.msra.mxu0 %v858_v12  ;;  %v29_v37 = vpack.c.bf16 %v22_v31, %v22_v31  ;;  %v902_v39 = vld [vmem:[%s1148_s1 + $0x180] sm:$0xff]  ;;  %v900_v42 = vld [vmem:[%s1148_s1 + $0x170] sm:$0xff]  ;;  %v891_v45 = vld [vmem:[%s1148_s1 + $0x128] sm:$0xff] }
   0xf   :  { %451 = vmatpush.bf16.msra.mxu1 %v866_v13  ;;  %v899_v46 = vld [vmem:[%s1148_s1 + $0x168] sm:$0xff]  ;;  %v890_v47 = vld [vmem:[%s1148_s1 + $0x120] sm:$0xff]  ;;  %v889_v49 = vld [vmem:[%s1148_s1 + $0x118] sm:$0xff] }
  0x10   :  { %464 = vmatpush.bf16.msra.mxu2 %v874_v14  ;;  %v898_v48 = vld [vmem:[%s1148_s1 + $0x160] sm:$0xff]  ;;  %v897_v50 = vld [vmem:[%s1148_s1 + $0x158] sm:$0xff]  ;;  %v27_v51 = vld [vmem:[%s1150_s0 + $0x30] sm:$0xff] }
  0x11   :  { %477 = vmatpush.bf16.msra.mxu3 %v882_v15  ;;  %v888_v52 = vld [vmem:[%s1148_s1 + $0x110] sm:$0xff]  ;;  %v34_v54 = vpack.c.bf16 %v27_v51, %v27_v51  ;;  %v887_v55 = vld [vmem:[%s1148_s1 + $0x108] sm:$0xff]  ;;  %v886_v57 = vld [vmem:[%s1148_s1 + $0x100] sm:$0xff] }
  0x12   :  { %439 = vmatpush.bf16.msra.mxu0 %v857_v16  ;;  %v896_v53 = vld [vmem:[%s1148_s1 + $0x150] sm:$0xff]  ;;  %v895_v56 = vld [vmem:[%s1148_s1 + $0x148] sm:$0xff]  ;;  %v894_v58 = vld [vmem:[%s1148_s1 + $0x140] sm:$0xff] }
  0x13   :  { %452 = vmatpush.bf16.msra.mxu1 %v865_v17  ;;  %v25_v59 = vld [vmem:[%s1150_s0 + $0x20] sm:$0xff]  ;;  %v26_v60 = vld [vmem:[%s1150_s0 + $0x28] sm:$0xff]  ;;  %v910_v63 = vld [vmem:[%s1152_s3 + $0x38] sm:$0xff] }
  0x14   :  { %465 = vmatpush.bf16.msra.mxu2 %v873_v18  ;;  %v32_v61 = vpack.c.bf16 %v25_v59, %v25_v59  ;;  %v33_v62 = vpack.c.bf16 %v26_v60, %v26_v60  ;;  %v909_v0 = vld [vmem:[%s1152_s3 + $0x30] sm:$0xff]  ;;  %v908_v1 = vld [vmem:[%s1152_s3 + $0x28] sm:$0xff]  ;;  %v907_v2 = vld [vmem:[%s1152_s3 + $0x20] sm:$0xff] }
  0x15   :  { %478 = vmatpush.bf16.msra.mxu3 %v881_v19  ;;  %v906_v3 = vld [vmem:[%s1152_s3 + $0x18] sm:$0xff]  ;;  %v905_v4 = vld [vmem:[%s1152_s3 + $0x10] sm:$0xff]  ;;  %v904_v5 = vld [vmem:[%s1152_s3 + $0x8] sm:$0xff] }
  0x16   :  { %440 = vmatpush.bf16.msra.mxu0 %v856_v20  ;;  %v903_v8 = vld [vmem:[%s1152_s3] sm:$0xff] }
  0x17   :  { %453 = vmatpush.bf16.msra.mxu1 %v864_v21  ;;  %v911_v13 = vld [vmem:[%s1149_s2] ss:$0 sm:$0xff] }
  0x18   :  { %466 = vmatpush.bf16.msra.mxu2 %v872_v22  ;;  %v912_v31 = vld [vmem:[%s1151_s4] ss:$0 sm:$0xff] }
  0x19   :  { %479 = vmatpush.bf16.msra.mxu3 %v880_v23 }
  0x1a   :  { %441 = vmatpush.bf16.msra.mxu0 %v855_v24 }
  0x1b   :  { %454 = vmatpush.bf16.msra.mxu1 %v863_v25 }
  0x1c   :  { %467 = vmatpush.bf16.msra.mxu2 %v871_v26 }
  0x1d   :  { %480 = vmatpush.bf16.msra.mxu3 %v879_v28 }
  0x1e   :  { %442 = vmatpush.bf16.msra.mxu0 %v854_v27 }
  0x1f   :  { %455 = vmatpush.bf16.msra.mxu1 %v862_v29 }
  0x20   :  { %468 = vmatpush.bf16.msra.mxu2 %v870_v34 }
  0x21   :  { %443 = vmatmul.bf16.vlgmr.msra.gmra.mxu0 %v28_v36  ;;  %481 = vmatpush.bf16.msra.mxu3 %v878_v38 }
  0x22   :  { %487 = vmatpush.bf16.msrb.mxu0 %v893_v32  ;;  %456 = vmatmul.bf16.vlgmr.msra.gmra.mxu1 %v29_v37 }
  0x23   :  { %500 = vmatpush.bf16.msrb.mxu1 %v901_v33  ;;  %469 = vmatmul.bf16.vlgmr.msra.gmra.mxu2 %v30_v43 }
  0x24   :  { %520 = vmatpush.bf16.msrb.mxu2 %v902_v39  ;;  %482 = vmatmul.bf16.vlgmr.msra.gmra.mxu3 %v31_v44 }
  0x25   :  { %596 = vmatpush.bf16.msrb.mxu3 %v910_v63 }
  0x26   :  { %488 = vmatpush.bf16.msrb.mxu0 %v892_v41 }
  0x27   :  { %501 = vmatpush.bf16.msrb.mxu1 %v900_v42 }
  0x29   :  { %597 = vmatpush.bf16.msrb.mxu3 %v909_v0 }
  0x2a   :  { %489 = vmatpush.bf16.msrb.mxu0 %v891_v45 }
  0x2b   :  { %502 = vmatpush.bf16.msrb.mxu1 %v899_v46 }
  0x2d   :  { %598 = vmatpush.bf16.msrb.mxu3 %v908_v1 }
  0x2e   :  { %490 = vmatpush.bf16.msrb.mxu0 %v890_v47 }
  0x2f   :  { %503 = vmatpush.bf16.msrb.mxu1 %v898_v48 }
  0x31   :  { %599 = vmatpush.bf16.msrb.mxu3 %v907_v2 }
  0x32   :  { %491 = vmatpush.bf16.msrb.mxu0 %v889_v49 }
  0x33   :  { %504 = vmatpush.bf16.msrb.mxu1 %v897_v50  ;;  %821 = vmatmul.msk.bf16.vlgmr.msrb.gmra.mxu2 %vm431_vm0, %v34_v54 }
  0x35   :  { %600 = vmatpush.bf16.msrb.mxu3 %v906_v3 }
  0x36   :  { %492 = vmatpush.bf16.msrb.mxu0 %v888_v52 }
  0x37   :  { %505 = vmatpush.bf16.msrb.mxu1 %v896_v53 }
  0x39   :  { %601 = vmatpush.bf16.msrb.mxu3 %v905_v4 }
  0x3a   :  { %493 = vmatpush.bf16.msrb.mxu0 %v887_v55 }
  0x3b   :  { %506 = vmatpush.bf16.msrb.mxu1 %v895_v56 }
  0x3d   :  { %602 = vmatpush.bf16.msrb.mxu3 %v904_v5 }
  0x3e   :  { %494 = vmatpush.bf16.msrb.mxu0 %v886_v57 }
  0x3f   :  { %507 = vmatpush.bf16.msrb.mxu1 %v894_v58 }
  0x41   :  { %495 = vmatmul.bf16.vlgmr.msrb.gmra.mxu0 %v32_v61  ;;  %603 = vmatpush.bf16.msrb.mxu3 %v903_v8 }
  0x42   :  { %508 = vmatmul.bf16.vlgmr.msrb.gmra.mxu1 %v33_v62 }
  0x9e   :  { %v444_v6 = vpop.f32.mrf.mxu0 }
  0x9f   :  { %v457_v7 = vpop.f32.mrf.mxu1  ;;  %v445_v14 = vadd.f32 %v911_v13, %v444_v6 }
  0xa1   :  { %v458_v17 = vadd.f32 %v457_v7, %v445_v14 }
  0xa6   :  { %v446_v9 = vpop.f32.mrf.mxu0  ;;  %v470_v11 = vpop.f32.mrf.mxu2 }
  0xa7   :  { %v459_v10 = vpop.f32.mrf.mxu1  ;;  %v483_v12 = vpop.f32.mrf.mxu3  ;;  %v471_v18 = vadd.f32 %v470_v11, %v458_v17 }
  0xa9   :  { %v484_v20 = vadd.f32 %v483_v12, %v471_v18 }
  0xae   :  { %v472_v15 = vpop.f32.mrf.mxu2 }
  0xaf   :  { %v485_v16 = vpop.f32.mrf.mxu3 }
  0xb6   :  { %v522_v19 = vpop.f32.mrf.mxu2 }
  0xbe   :  { %v496_v21 = vpop.f32.mrf.mxu0  ;;  %v524_v25 = vpop.f32.mrf.mxu2 }
  0xbf   :  { %v509_v22 = vpop.f32.mrf.mxu1  ;;  %v497_v23 = vadd.f32 %v496_v21, %v484_v20 }
  0xc1   :  { %v510_v24 = vadd.f32 %v509_v22, %v497_v23 }
  0xc3   :  { %v523_v26 = vadd.f32 %v522_v19, %v510_v24 }
  0xc5   :  { %v526_v27 = vmax.f32 %v523_v26, 0.0 }
  0xc6   :  { %v498_v28 = vpop.f32.mrf.mxu0 }
  0xc7   :  { %v511_v29 = vpop.f32.mrf.mxu1  ;;  %v527_v30 = vpack.c.bf16 %v526_v27, %v526_v27 }
  0xc9   :  { %604 = vmatmul.bf16.vlgmr.msrb.gmra.mxu3 %v527_v30 }
 0x14c   :  { %v605_v32 = vpop.f32.mrf.mxu3 }
 0x14d   :  { %v606_v33 = vadd.f32 %v912_v31, %v605_v32 }
 0x14f   :  { %609 = vmax.xlane.f32.xlu0 %v606_v33 }
 0x154   :  { %v607_v34 = vpop.f32.mrf.mxu3 }
 0x1c2   :  { %v610_v35 = vpop.xlane.xlu0 %609 }
 0x1c3   :  { %v611_v36 = vsub.f32 %v606_v33, %v610_v35 }
 0x1c5   :  { %v612_v37 = vmul.f32 1.442695, %v611_v36 }
 0x1c7   :  { %913 = vpow2.f32 %v612_v37 }
 0x1cd   :  { %v914_v38 = vpop.eup %913 }
 0x1ce   :  { %614 = vadd.xlane.f32.xlu0 %v914_v38 }
 0x241   :  { %v615_v39 = vpop.xlane.xlu0 %614 }
 0x242   :  { %915 = vlog2.f32 %v615_v39 }
 0x248   :  { %v916_v40 = vpop.eup %915 }
 0x249   :  { %v617_v41 = vmul.f32 0.6931472, %v916_v40 }
 0x24b   :  { %v618_v42 = vsub.f32 %v611_v36, %v617_v41 }
 0x24d   :  { %v619_v43 = vpack.c.bf16 %v618_v42, %v618_v42 }
 0x24f   :  { %620 = vst [vmem:[%s1153_s5] sm:$0xf] %v619_v43 }

</bundles_post_ra>
